<compile_context>
chip_gen: v5e
topology: v5e:2x2
jax: 0.10.0
libtpu: 0.0.40
codegen_flags: <defaults>
</compile_context>

<pallas_src>
import functools

import jax
import jax.numpy as jnp
from jax.experimental import pallas as pl
from jax.experimental.pallas import tpu as pltpu

GAMMA = 2.0


def _round_up(v, m):
    return ((v + m - 1) // m) * m


def _focal_loss_kernel(x_ref, t_ref, o_ref, acc_ref, *, gamma, n_rows,
                       block_rows, inner_steps, n_blocks, need_mask,
                       has_phantom):
    j = pl.program_id(1)

    @pl.when(j == 0)
    def _init():
        acc_ref[...] = jnp.zeros_like(acc_ref)

    x = x_ref[...].astype(jnp.float32)
    t = t_ref[...].astype(jnp.float32)

    xt = x * t
    # Numerically stable BCE-with-logits: max(x,0) - x*t + log1p(exp(-|x|))
    # (algebraically identical to the reference max_val formulation).
    bce = jnp.maximum(x, 0.0) - xt + jnp.log1p(jnp.exp(-jnp.abs(x)))

    # z = -x * (2t - 1) == x - 2*x*t   (reuses xt -> saves 2 VALU ops/elem).
    z = x - 2.0 * xt
    if float(gamma) == 2.0:
        # exp(2*logsigmoid(z)) == sigmoid(z)^2, sigmoid via tanh:
        # 1 EUP tanh, no divide, no select.
        sig = 0.5 * (1.0 + jnp.tanh(0.5 * z))
        mod = sig * sig
    else:
        logsig = jnp.minimum(z, 0.0) - jnp.log1p(jnp.exp(-jnp.abs(z)))
        mod = jnp.exp(logsig * gamma)

    loss = mod * bce
    w = loss.shape[-1]

    def _fold(v):
        # Fold sublane groups onto the (8, W) accumulator: pure VALU adds per
        # step; the expensive cross-lane reduce happens once in the epilogue.
        return v.reshape(block_rows // 8, 8, w).sum(axis=0)

    if need_mask or has_phantom:
        gb = pl.program_id(0) * inner_steps + j
        last_real = n_blocks - 1
        full_limit = last_real if need_mask else n_blocks

        @pl.when(gb < full_limit)
        def _acc_full():
            acc_ref[...] += _fold(loss)

        if need_mask:
            @pl.when(gb == last_real)
            def _acc_tail():
                rows = last_real * block_rows + jax.lax.broadcasted_iota(
                    jnp.int32, loss.shape, 0)
                acc_ref[...] += _fold(jnp.where(rows < n_rows, loss, 0.0))
        # Phantom blocks (gb >= n_blocks) contribute nothing.
    else:
        acc_ref[...] += _fold(loss)

    @pl.when(j == pl.num_programs(1) - 1)
    def _finalize():
        o_ref[...] = jnp.sum(acc_ref[...], keepdims=True)   # (1, 1) partial


def _compute_view(n, c):
    """Pick a lane-dense (rows, width) view of the (n, c) element grid.

    The loss is elementwise + global sum, so any reshape is valid. When C
    does not fill 128-lane vregs, re-tile the flat element stream into
    width-{1024,512,256,128} rows (free bitcast-style reshape in XLA)."""
    if c % 128 == 0:
        return n, c
    total = n * c
    for w in (1024, 512, 256, 128):
        if total % w == 0:
            return total // w, w
    return n, c   # fallback: full-extent last dim (allowed, just lane-sparse)


def focal_loss(x, t, *, gamma=GAMMA, block_rows=None,
               target_tile_bytes=4 << 20):
    if x.shape != t.shape:
        raise ValueError("Target size must be the same as input size")
    assert x.ndim == 2
    n, c = x.shape

    r, w = _compute_view(n, c)
    xv = x if (r, w) == (n, c) else x.reshape(r, w)
    tv = t if (r, w) == (n, c) else t.reshape(r, w)

    itemsize = max(jnp.dtype(x.dtype).itemsize, jnp.dtype(t.dtype).itemsize)

    try:
        vmem_cap = int(pltpu.get_tpu_info().vmem_capacity_bytes)
    except Exception:   # conservative fallback (v7x per-core size)
        vmem_cap = 64 * 1024 * 1024

    if block_rows is None:
        # ~4 MiB input tile amortizes the ~0.35us per-grid-step overhead even
        # at v7x HBM bandwidth; bytes-based cap (no hard row cap).
        block_rows = (target_tile_bytes // (w * itemsize)) // 8 * 8
    # 2 inputs x 2 pipeline buffers must leave plenty of VMEM headroom.
    max_rows_by_vmem = ((vmem_cap // 8) // (w * itemsize)) // 8 * 8
    block_rows = max(8, min(block_rows, max_rows_by_vmem, _round_up(r, 8)))
    block_rows = _round_up(block_rows, 8)

    n_blocks = pl.cdiv(r, block_rows)
    need_mask = (r % block_rows) != 0

    # Always engage the 2-way outer split when there is more than one block:
    # on v7x this lets the row loop shard across the 2 TensorCores; on 1-TC
    # chips it is just a serial loop with negligible overhead. Odd block
    # counts get one phantom block (clamped index map, skipped by pl.when).
    num_parts = 2 if n_blocks >= 2 else 1
    inner_steps = pl.cdiv(n_blocks, num_parts)
    has_phantom = num_parts * inner_steps > n_blocks

    kernel = functools.partial(
        _focal_loss_kernel, gamma=gamma, n_rows=r, block_rows=block_rows,
        inner_steps=inner_steps, n_blocks=n_blocks, need_mask=need_mask,
        has_phantom=has_phantom)

    tile_bytes = block_rows * w * itemsize
    vmem_need = 4 * tile_bytes + (8 << 20)   # 2 inputs x 2 buffers + slack
    vmem_limit = int(min(int(vmem_cap * 0.85),
                         max(16 * 1024 * 1024, vmem_need)))

    def _in_map(p, j):
        gb = p * inner_steps + j
        if has_phantom:
            gb = jnp.minimum(gb, n_blocks - 1)   # clamp phantom block (skipped)
        return (gb, 0)

    partials = pl.pallas_call(
        kernel,
        out_shape=jax.ShapeDtypeStruct((num_parts, 1), jnp.float32),
        grid_spec=pltpu.PrefetchScalarGridSpec(
            num_scalar_prefetch=0,
            grid=(num_parts, inner_steps),
            in_specs=[
                pl.BlockSpec((block_rows, w), _in_map),
                pl.BlockSpec((block_rows, w), _in_map),
            ],
            out_specs=pl.BlockSpec((1, 1), lambda p, j: (p, 0)),
            scratch_shapes=[pltpu.VMEM((8, w), jnp.float32)],
        ),
        compiler_params=pltpu.CompilerParams(
            dimension_semantics=("parallel", "arbitrary"),
            vmem_limit_bytes=vmem_limit,
        ),
    )(xv, tv)

    # loss.sum(dim=1).mean() over (N, C) == total_sum / N.
    return jnp.sum(partials) / n


def _focal_loss_ref(x, t, gamma=GAMMA):
    x = x.astype(jnp.float32)
    t = t.astype(jnp.float32)
    max_val = jnp.maximum(-x, 0.0)
    bce = x - x * t + max_val + jnp.log(jnp.exp(-max_val) + jnp.exp(-x - max_val))
    z = -x * (t * 2.0 - 1.0)
    invprobs = jnp.minimum(z, 0.0) - jnp.log1p(jnp.exp(-jnp.abs(z)))
    loss = jnp.exp(invprobs * gamma) * bce
    return loss.sum(axis=1).mean()


if __name__ == "__main__":
    key = jax.random.PRNGKey(0)
    k1, k2, k3, k4, k5, k6, k7, k8 = jax.random.split(key, 8)

    # 1) Small case: single block, default tile sizing, C already lane-dense.
    N, C = 16, 128
    x = jax.random.normal(k1, (N, C), dtype=jnp.float32) * 2.0
    t = (jax.random.uniform(k2, (N, C)) > 0.5).astype(jnp.float32)
    out = jax.block_until_ready(focal_loss(x, t))
    ref = _focal_loss_ref(x, t)
    assert jnp.allclose(out, ref, rtol=1e-5, atol=1e-5), (out, ref)

    # 2) Small-C case: lane-densified to (25, 512); block_rows=8 ->
    #    4 blocks, 2-way split (even), and a masked tail block (25 % 8 != 0).
    N2, C2 = 200, 64
    x2 = jax.random.normal(k3, (N2, C2), dtype=jnp.float32) * 3.0
    t2 = (jax.random.uniform(k4, (N2, C2)) > 0.5).astype(jnp.float32)
    out2 = jax.block_until_ready(focal_loss(x2, t2, block_rows=8))
    ref2 = _focal_loss_ref(x2, t2)
    assert jnp.allclose(out2, ref2, rtol=1e-5, atol=1e-5), (out2, ref2)

    # 3) Odd block count: 5 blocks -> 2-way split with one phantom block
    #    (skipped by pl.when), no tail mask.
    N3, C3 = 40, 128
    x3 = jax.random.normal(k5, (N3, C3), dtype=jnp.float32) * 2.0
    t3 = (jax.random.uniform(k6, (N3, C3)) > 0.5).astype(jnp.float32)
    out3 = jax.block_until_ready(focal_loss(x3, t3, block_rows=8))
    ref3 = _focal_loss_ref(x3, t3)
    assert jnp.allclose(out3, ref3, rtol=1e-5, atol=1e-5), (out3, ref3)

    # 4) Non-default gamma + non-lane-dense fallback (C=100, full-extent last
    #    dim) exercising the general logsigmoid modulator path.
    N4, C4 = 24, 100
    x4 = jax.random.normal(k7, (N4, C4), dtype=jnp.float32) * 2.0
    t4 = (jax.random.uniform(k8, (N4, C4)) > 0.5).astype(jnp.float32)
    out4 = jax.block_until_ready(focal_loss(x4, t4, gamma=3.0))
    ref4 = _focal_loss_ref(x4, t4, gamma=3.0)
    assert jnp.allclose(out4, ref4, rtol=1e-5, atol=1e-5), (out4, ref4)

    print("KERNEL_OK")
</pallas_src>

<mosaic_0001>
module attributes {stable_mosaic.version = 11 : i64} {
  func.func @_focal_loss_kernel(%arg0: i32, %arg1: i32, %arg2: memref<16x128xf32, #tpu.memory_space<vmem>>, %arg3: memref<16x128xf32, #tpu.memory_space<vmem>>, %arg4: memref<1x1xf32, #tpu.memory_space<vmem>>, %arg5: memref<8x128xf32, #tpu.memory_space<vmem>>) attributes {dimension_semantics = [#tpu.dimension_semantics<parallel>, #tpu.dimension_semantics<arbitrary>], iteration_bounds = array<i64: 1, 1>, scalar_prefetch = 0 : i64, scratch_operands = 1 : i64, tpu.core_type = #tpu.core_type<tc>, window_params = [{transform_indices = @transform_0, window_bounds = array<i64: 16, 128>}, {transform_indices = @transform_1, window_bounds = array<i64: 16, 128>}, {transform_indices = @transform_2, window_bounds = array<i64: 1, 1>}]} {
    %c0_i32 = arith.constant 0 : i32
    %0 = arith.cmpi eq, %arg1, %c0_i32 : i32
    %1 = arith.extui %0 : i1 to i32
    %c0_i32_0 = arith.constant 0 : i32
    %2 = arith.cmpi ne, %1, %c0_i32_0 : i32
    scf.if %2 {
      %cst_16 = arith.constant 0.000000e+00 : f32
      %35 = vector.broadcast %cst_16 : f32 to vector<8x128xf32>
      %c0_17 = arith.constant 0 : index
      %c0_18 = arith.constant 0 : index
      %36 = vector.load %arg5[%c0_17, %c0_18] : memref<8x128xf32, #tpu.memory_space<vmem>>, vector<8x128xf32>
      tpu.vector_store %arg5[%c0_17, %c0_18], %35 {strides = array<i32>} : memref<8x128xf32, #tpu.memory_space<vmem>>, vector<8x128xf32>,
    } else {
    }
    %c0 = arith.constant 0 : index
    %c0_1 = arith.constant 0 : index
    %3 = vector.load %arg2[%c0, %c0_1] : memref<16x128xf32, #tpu.memory_space<vmem>>, vector<16x128xf32>
    %c0_2 = arith.constant 0 : index
    %c0_3 = arith.constant 0 : index
    %4 = vector.load %arg3[%c0_2, %c0_3] : memref<16x128xf32, #tpu.memory_space<vmem>>, vector<16x128xf32>
    %5 = arith.mulf %3, %4 : vector<16x128xf32>
    %cst = arith.constant 0.000000e+00 : f32
    %6 = vector.broadcast %cst : f32 to vector<16x128xf32>
    %7 = arith.maximumf %3, %6 : vector<16x128xf32>
    %8 = arith.subf %7, %5 : vector<16x128xf32>
    %9 = math.absf %3 : vector<16x128xf32>
    %cst_4 = arith.constant 0.000000e+00 : f32
    %10 = vector.broadcast %cst_4 : f32 to vector<16x128xf32>
    %11 = arith.subf %10, %9 : vector<16x128xf32>
    %12 = math.exp %11 : vector<16x128xf32>
    %13 = math.log1p %12 : vector<16x128xf32>
    %14 = arith.addf %8, %13 : vector<16x128xf32>
    %cst_5 = arith.constant 2.000000e+00 : f32
    %15 = vector.broadcast %cst_5 : f32 to vector<16x128xf32>
    %16 = arith.mulf %15, %5 : vector<16x128xf32>
    %17 = arith.subf %3, %16 : vector<16x128xf32>
    %cst_6 = arith.constant 5.000000e-01 : f32
    %18 = vector.broadcast %cst_6 : f32 to vector<16x128xf32>
    %19 = arith.mulf %18, %17 : vector<16x128xf32>
    %20 = math.tanh %19 : vector<16x128xf32>
    %cst_7 = arith.constant 1.000000e+00 : f32
    %21 = vector.broadcast %cst_7 : f32 to vector<16x128xf32>
    %22 = arith.addf %21, %20 : vector<16x128xf32>
    %cst_8 = arith.constant 5.000000e-01 : f32
    %23 = vector.broadcast %cst_8 : f32 to vector<16x128xf32>
    %24 = arith.mulf %23, %22 : vector<16x128xf32>
    %25 = arith.mulf %24, %24 : vector<16x128xf32>
    %26 = arith.mulf %25, %14 : vector<16x128xf32>
    %c0_9 = arith.constant 0 : index
    %c0_10 = arith.constant 0 : index
    %27 = vector.load %arg5[%c0_9, %c0_10] : memref<8x128xf32, #tpu.memory_space<vmem>>, vector<8x128xf32>
    %28 = vector.shape_cast %26 : vector<16x128xf32> to vector<2x8x128xf32>
    %cst_11 = arith.constant dense<0.000000e+00> : vector<8x128xf32>
    %29 = vector.multi_reduction <add>, %28, %cst_11 [0] : vector<2x8x128xf32> to vector<8x128xf32>
    %30 = arith.addf %27, %29 : vector<8x128xf32>
    %c0_12 = arith.constant 0 : index
    %c0_13 = arith.constant 0 : index
    %31 = vector.load %arg5[%c0_12, %c0_13] : memref<8x128xf32, #tpu.memory_space<vmem>>, vector<8x128xf32>
    tpu.vector_store %arg5[%c0_12, %c0_13], %30 {strides = array<i32>} : memref<8x128xf32, #tpu.memory_space<vmem>>, vector<8x128xf32>,
    %c0_i32_14 = arith.constant 0 : i32
    %32 = arith.cmpi eq, %arg1, %c0_i32_14 : i32
    %33 = arith.extui %32 : i1 to i32
    %c0_i32_15 = arith.constant 0 : i32
    %34 = arith.cmpi ne, %33, %c0_i32_15 : i32
    scf.if %34 {
      %c0_16 = arith.constant 0 : index
      %c0_17 = arith.constant 0 : index
      %35 = vector.load %arg5[%c0_16, %c0_17] : memref<8x128xf32, #tpu.memory_space<vmem>>, vector<8x128xf32>
      %36 = vector.shape_cast %35 : vector<8x128xf32> to vector<1x8x128xf32>
      %cst_18 = arith.constant dense<0.000000e+00> : vector<1xf32>
      %37 = vector.multi_reduction <add>, %36, %cst_18 [1, 2] : vector<1x8x128xf32> to vector<1xf32>
      %38 = vector.shape_cast %37 : vector<1xf32> to vector<1x1x1xf32>
      %39 = vector.extract %38[0, 0, 0] : f32 from vector<1x1x1xf32>
      %40 = vector.broadcast %39 : f32 to vector<1x1xf32>
      %c0_19 = arith.constant 0 : index
      %c0_20 = arith.constant 0 : index
      %41 = vector.load %arg4[%c0_19, %c0_20] : memref<1x1xf32, #tpu.memory_space<vmem>>, vector<1x1xf32>
      tpu.vector_store %arg4[%c0_19, %c0_20], %40 {strides = array<i32>} : memref<1x1xf32, #tpu.memory_space<vmem>>, vector<1x1xf32>,
    } else {
    }
    return
  }
  func.func @transform_0(%arg0: i32, %arg1: i32) -> (i32, i32) {
    %c1_i32 = arith.constant 1 : i32
    %0 = arith.muli %arg0, %c1_i32 : i32
    %1 = arith.addi %0, %arg1 : i32
    %c0_i32 = arith.constant 0 : i32
    %c0_i32_0 = arith.constant 0 : i32
    return %1, %c0_i32 : i32, i32
  }
  func.func @transform_1(%arg0: i32, %arg1: i32) -> (i32, i32) {
    %c1_i32 = arith.constant 1 : i32
    %0 = arith.muli %arg0, %c1_i32 : i32
    %1 = arith.addi %0, %arg1 : i32
    %c0_i32 = arith.constant 0 : i32
    %c0_i32_0 = arith.constant 0 : i32
    return %1, %c0_i32 : i32, i32
  }
  func.func @transform_2(%arg0: i32, %arg1: i32) -> (i32, i32) {
    %c0_i32 = arith.constant 0 : i32
    %c0_i32_0 = arith.constant 0 : i32
    return %arg0, %c0_i32 : i32, i32
  }
}

</mosaic_0001>

<bundles_post_ra>
// kernel: tpu_custom_call.1
= control target key start
LH: loop header
LB: loop body
LE: loop exit
PB: predicated region body
PF: predicated region fallthrough
CT: control target
= control target key end

     0   :  { %7 = vsyncpa [#allocation4], 0  ;;  %s279_s0 = inlined_call_operand.hbm [shape: f32[16,128], index: 0, kind: input, shape index: {}]   ;;  %s280_s1 = inlined_call_operand.hbm [shape: f32[16,128], index: 1, kind: input, shape index: {}]   ;;  %s281_s2 = inlined_call_operand.hbm [shape: f32[1,1], index: 2, kind: output, shape index: {}]  }
   0x1   :  { %8 = vsyncpa [#allocation7], 0 }
   0x2   :  { %9 = vsyncpa [#allocation5], 0  ;;  %s18_s11 = sshll.u32 %s279_s0, 4  ;;  %s250_s12 = smov [#allocation3]   ;;  %s19_s11 = int_to_ptr.hbm [resolvable:$true] %s18_s11 }
   0x3   :  { %s20_s13 = sshll.u32 %s250_s12, 4  ;;  %s35_s16 = sshll.u32 %s280_s1, 4  ;;  %s21_s13 = int_to_ptr.vmem [resolvable:$true] %s20_s13  ;;  %s36_s16 = int_to_ptr.hbm [resolvable:$true] %s35_s16 }
   0x4   :  { %s251_s17 = smov 128   ;;  %s252_s18 = smov 8  }
   0x5   :  { %26 = dma.hbm_to_vmem [thread:$0]  %s19_s11, 256, %s21_s13, [#allocation4], %s251_s17, %s251_s17, %s252_s18  }
   0x6   :  { %s253_s19 = smov [#allocation6]  }
   0x7   :  { %s37_s20 = sshll.u32 %s253_s19, 4  ;;  %s38_s20 = int_to_ptr.vmem [resolvable:$true] %s37_s20 }
   0x8   :  { %43 = dma.hbm_to_vmem [thread:$0]  %s36_s16, 256, %s38_s20, [#allocation7], %s251_s17, %s251_s17, %s252_s18  }
   0x9   :  { %244 = dma.done.wait [#allocation4], 256  }
   0xa   :  { %245 = vsyncadd [#allocation4], 4294967040 }
   0xb   :  { %246 = dma.done.wait [#allocation7], 256  }
   0xc   :  { %247 = vsyncadd [#allocation7], 4294967040  ;;  %v61_v0 = vld [vmem:[#allocation3] sm:$0xff]  ;;  %v62_v1 = vld [vmem:[#allocation3 + $0x8] sm:$0xff]  ;;  %s254_s0 = smov [#allocation8]   ;;  %s142_s23 = sshll.u32 %s281_s2, 4  ;;  %s143_s23 = int_to_ptr.hbm [resolvable:$true] %s142_s23 }
   0xd   :  { %v63_v2 = vld [vmem:[#allocation6] sm:$0xff]  ;;  %v64_v3 = vld [vmem:[#allocation6 + $0x8] sm:$0xff]  ;;  %v71_v5 = vand.u32 2147483647, %v61_v0  ;;  %v72_v7 = vand.u32 2147483647, %v62_v1 }
   0xe   :  { %v65_v4 = vmul.f32 %v63_v2, %v61_v0  ;;  %v66_v6 = vmul.f32 %v64_v3, %v62_v1  ;;  %v67_v29 = vmax.f32 %v61_v0, 0.0  ;;  %v68_v32 = vmax.f32 %v62_v1, 0.0  ;;  %s140_s1 = sshll.u32 %s254_s0, 4  ;;  %s141_s1 = int_to_ptr.vmem [resolvable:$true] %s140_s1 }
   0xf   :  { %v73_v8 = vsub.f32 0.0, %v71_v5  ;;  %v74_v10 = vsub.f32 0.0, %v72_v7  ;;  %vm133_vm2 = vcmask 0  }
  0x10   :  { %v99_v9 = vmul.f32 2.0, %v65_v4  ;;  %v100_v11 = vmul.f32 2.0, %v66_v6  ;;  %v69_v38 = vsub.f32 %v67_v29, %v65_v4  ;;  %v70_v41 = vsub.f32 %v68_v32, %v66_v6 }
  0x11   :  { %v75_v12 = vmul.f32 1.442695, %v73_v8  ;;  %v77_v14 = vmul.f32 1.442695, %v74_v10 }
  0x12   :  { %v101_v13 = vsub.f32 %v61_v0, %v99_v9  ;;  %v102_v15 = vsub.f32 %v62_v1, %v100_v11 }
  0x13   :  { %160 = vpow2.f32 %v75_v12 }
  0x14   :  { %v103_v16 = vmul.f32 0.5, %v101_v13  ;;  %162 = vpow2.f32 %v77_v14  ;;  %v104_v17 = vmul.f32 0.5, %v102_v15 }
  0x16   :  { %164 = vtanh.f32 %v103_v16 }
  0x17   :  { %166 = vtanh.f32 %v104_v17 }
  0x19   :  { %v161_v18 = vpop.eup %160 }
  0x1a   :  { %v163_v19 = vpop.eup %162  ;;  %v79_v20 = vadd.f32 1.0, %v161_v18  ;;  %v82_v21 = vmul.f32 -0.5, %v161_v18  ;;  %v85_v30 = vand.u32 2147483647, %v161_v18 }
  0x1b   :  { %v88_v23 = vadd.f32 1.0, %v163_v19  ;;  %v91_v24 = vmul.f32 -0.5, %v163_v19  ;;  %v94_v33 = vand.u32 2147483647, %v163_v19 }
  0x1c   :  { %v165_v22 = vpop.eup %164  ;;  %168 = vlog2.f32 %v79_v20  ;;  %v83_v27 = vadd.f32 1.0, %v82_v21  ;;  %vm86_vm0 = vcmp.lt.f32.partialorder %v85_v30, 0.0004427343 }
  0x1d   :  { %v167_v25 = vpop.eup %166  ;;  %v107_v26 = vadd.f32 1.0, %v165_v22  ;;  %170 = vlog2.f32 %v88_v23  ;;  %v92_v31 = vadd.f32 1.0, %v91_v24  ;;  %vm95_vm1 = vcmp.lt.f32.partialorder %v94_v33, 0.0004427343 }
  0x1e   :  { %v108_v28 = vadd.f32 1.0, %v167_v25  ;;  %v84_v35 = vmul.f32 %v161_v18, %v83_v27 }
  0x1f   :  { %v109_v34 = vmul.f32 0.5, %v107_v26  ;;  %v93_v39 = vmul.f32 %v163_v19, %v92_v31 }
  0x20   :  { %v110_v36 = vmul.f32 0.5, %v108_v28 }
  0x21   :  { %v111_v44 = vmul.f32 %v109_v34, %v109_v34 }
  0x22   :  { %v169_v37 = vpop.eup %168  ;;  %v112_v46 = vmul.f32 %v110_v36, %v110_v36 }
  0x23   :  { %v171_v40 = vpop.eup %170  ;;  %v81_v42 = vmul.f32 0.6931472, %v169_v37 }
  0x24   :  { %v90_v43 = vmul.f32 0.6931472, %v171_v40 }
  0x25   :  { %v87_v45 = vsel %vm86_vm0, %v84_v35, %v81_v42 }
  0x26   :  { %v96_v47 = vsel %vm95_vm1, %v93_v39, %v90_v43  ;;  %v97_v48 = vadd.f32 %v87_v45, %v69_v38 }
  0x27   :  { %v98_v49 = vadd.f32 %v96_v47, %v70_v41 }
  0x28   :  { %v113_v50 = vmul.f32 %v111_v44, %v97_v48 }
  0x29   :  { %v114_v51 = vmul.f32 %v112_v46, %v98_v49 }
  0x2b   :  { %v116_v52 = vadd.f32 %v114_v51, %v113_v50 }
  0x2d   :  { %123 = vadd.xlane.f32.xlu0 %v116_v52 }
  0xa0   :  { %v124_v53 = vpop.xlane.xlu0 %123 }
  0xa1   :  { %v125_v54 = vrot.slane %v124_v53, 4 }
  0xa3   :  { %v126_v55 = vadd.f32 %v125_v54, %v124_v53 }
  0xa5   :  { %v127_v56 = vrot.slane %v126_v55, 2 }
  0xa7   :  { %v128_v57 = vadd.f32 %v127_v56, %v126_v55 }
  0xa9   :  { %v129_v58 = vrot.slane %v128_v57, 1 }
  0xab   :  { %v130_v59 = vadd.f32 %v129_v58, %v128_v57 }
  0xad   :  { %153 = vpush %v130_v59 }
  0xde   :  { %s154_s24 = spop %153 }
  0xdf   :  { %v132_v60 = vstv %s154_s24 }
  0xe0   :  { %134 = vst.msk [vmem:[#allocation8] sm:$0x1] %vm133_vm2, %v132_v60 }
  0xe1   :  { %145 = dma.vmem_to_hbm [thread:$0]  %s141_s1, 16, %s143_s23, [#allocation5]  }
  0xe2   :  { %248 = dma.done.wait [#allocation5], 16  }
  0xe3   :  { %249 = vsyncadd [#allocation5], 4294967280 }
  0xe4   :  { %150 = vsyncpa [#allocation4], 1 }
  0xe5   :  { %151 = vsyncpa [#allocation7], 1 }
  0xe6   :  { %152 = vsyncpa [#allocation5], 1 }

</bundles_post_ra>
